<compile_context>
chip_gen: v7x
topology: tpu7x:2x2x1
jax: 0.10.0
libtpu: 0.0.40
codegen_flags: <defaults>
</compile_context>

<pallas_src>
import functools

import jax
import jax.numpy as jnp
from jax.experimental import pallas as pl
from jax.experimental.pallas import tpu as pltpu


def _round_up(v, m):
    return ((v + m - 1) // m) * m


def _cdiv(a, b):
    return (a + b - 1) // b


def _vmem_capacity_bytes():
    try:
        cap = getattr(pltpu.get_tpu_info(), "vmem_capacity_bytes", None)
        if cap:
            return int(cap)
    except Exception:
        pass
    return 64 * 1024 * 1024  # conservative fallback (v7x per-core VMEM)


# ---------------------------------------------------------------------------
# Kernel 1: all weights resident, fused [W1 | Ws] matmul.
# ---------------------------------------------------------------------------
def _fused_kernel(x_ref, wcat_ref, b1_ref, w2_ref, b2s_ref, o_ref, *,
                  last_layer: bool):
    out_p = w2_ref.shape[0]
    x = x_ref[...]                                                  # (tb, in)

    # One MXU pass for both x-LHS matmuls: x @ [W1 | Ws] -> (tb, 2*out_p).
    fused = jnp.dot(x, wcat_ref[...], preferred_element_type=jnp.float32)

    # Main branch: h = relu(x @ W1 + b1); cast back for the bf16 MXU path.
    h = jnp.maximum(fused[:, :out_p] + b1_ref[...], 0.0).astype(w2_ref.dtype)

    # out = h @ W2 + (b2 + bs) + residual        (residual = x @ Ws slice)
    out = jnp.dot(h, w2_ref[...], preferred_element_type=jnp.float32)
    out = out + b2s_ref[...] + fused[:, out_p:]

    if not last_layer:
        out = jnp.maximum(out, 0.0)
    o_ref[...] = out.astype(o_ref.dtype)


# ---------------------------------------------------------------------------
# Kernel 2: hidden (= out_size) contraction axis tiled; W1 columns / W2 rows
# streamed, f32 accumulator in VMEM.  Used when resident weights don't fit.
# ---------------------------------------------------------------------------
def _hidden_tiled_kernel(x_ref, w1_ref, b1_ref, w2_ref, ws_ref, b2s_ref,
                         o_ref, acc_ref, *, last_layer: bool):
    k = pl.program_id(1)

    @pl.when(k == 0)
    def _():
        # Initialize the accumulator with the shortcut branch + folded biases.
        acc_ref[...] = (
            jnp.dot(x_ref[...], ws_ref[...], preferred_element_type=jnp.float32)
            + b2s_ref[...])

    h = jnp.dot(x_ref[...], w1_ref[...], preferred_element_type=jnp.float32)
    h = jnp.maximum(h + b1_ref[...], 0.0).astype(w2_ref.dtype)
    acc_ref[...] += jnp.dot(h, w2_ref[...], preferred_element_type=jnp.float32)

    @pl.when(k == pl.num_programs(1) - 1)
    def _():
        out = acc_ref[...]
        if not last_layer:
            out = jnp.maximum(out, 0.0)
        o_ref[...] = out.astype(o_ref.dtype)


# ---------------------------------------------------------------------------
# Wrapper
# ---------------------------------------------------------------------------
def residual_block(x, w1, b1, w2, b2, ws, bs, *, last_layer=False,
                   max_tile_b=256, max_tile_k=256, force_hidden_tiling=False):
    """x: (B, in_size); w1/ws: (in, out); w2: (out, out); b*: (1, out).

    Weights are stored transposed w.r.t. torch.nn.Linear, i.e. (in, out),
    so the kernel computes x @ W + b directly on the MXU.
    """
    B, in_size = x.shape
    out_size = w1.shape[1]
    dtype = x.dtype
    itemsize = jnp.dtype(dtype).itemsize
    # Sublane packing: f32 -> 8 rows/vreg, bf16 -> 16, int8/fp8 -> 32.
    sub = {4: 8, 2: 16, 1: 32}.get(itemsize, 8)

    out_p = _round_up(out_size, 128)   # lane-dense N: unmasked vst on stores
    # K (in_size) is deliberately NOT padded: a full-extent block dim is legal
    # and padding would waste MXU work plus an extra HBM copy of x.

    cap = _vmem_capacity_bytes()
    budget = (cap * 3) // 4            # headroom for Mosaic scratch / spill

    # ---- batch tile --------------------------------------------------------
    b_aligned = _round_up(B, sub)
    tile_b = _round_up(min(max_tile_b, b_aligned), sub)
    # Megacore: ensure >= 2 grid steps (both TCs busy on v7x) as long as each
    # half still fills >= 128 MXU rows.
    if _cdiv(b_aligned, tile_b) == 1 and tile_b >= 256:
        tile_b = _round_up(_cdiv(tile_b, 2), sub)
    floor_b = min(tile_b, max(sub, min(128, b_aligned)))

    # ---- padded parameters (bs folded into b2) -----------------------------
    pad_n = out_p - out_size
    w1p = jnp.pad(w1, ((0, 0), (0, pad_n)))
    wsp = jnp.pad(ws, ((0, 0), (0, pad_n)))
    w2p = jnp.pad(w2, ((0, pad_n), (0, pad_n)))
    b1p = jnp.pad(b1, ((0, 0), (0, pad_n)))
    b2sp = jnp.pad(b2 + bs, ((0, 0), (0, pad_n)))

    # ---- path selection: resident-fused vs hidden-tiled --------------------
    resident_bytes = (2 * in_size * out_p + out_p * out_p + 2 * out_p) * itemsize

    def fused_vmem(tb):
        pipelined = 2 * (tb * in_size + tb * out_p) * itemsize  # x/out dbl-buf
        interm = 4 * tb * out_p * 4                             # f32 fused/h/out
        return resident_bytes + pipelined + interm

    while tile_b > floor_b and fused_vmem(tile_b) > budget:
        tile_b = max(floor_b, _round_up(tile_b // 2, sub))
    use_fused = (not force_hidden_tiling) and fused_vmem(tile_b) <= budget

    tile_k = 0
    if not use_fused:
        tile_k = min(max_tile_k, 256 if out_p % 256 == 0 else 128)
        tile_k = max(128, (tile_k // 128) * 128)
        while out_p % tile_k:
            tile_k -= 128

        def hidden_vmem(tb, tk):
            res_bytes = (in_size * out_p + out_p) * itemsize     # Ws + b2s
            pipelined = 2 * (tb * in_size + in_size * tk + tk
                             + tk * out_p + tb * out_p) * itemsize
            interm = (tb * tk + tb * out_p) * 4                  # f32 h / dot
            acc = tb * out_p * 4
            return res_bytes + pipelined + interm + acc

        while tile_k > 128 and hidden_vmem(tile_b, tile_k) > budget:
            tile_k //= 2
        while tile_b > sub and hidden_vmem(tile_b, tile_k) > budget:
            tile_b = max(sub, _round_up(tile_b // 2, sub))
        # TODO(synk): if Ws alone still exceeds the budget (huge in/out sizes),
        # add an out_size (N) grid axis tiling Ws / W2 columns and the output.

    # Balance batch tiles so the last one carries minimal padding.
    grid_b = _cdiv(b_aligned, tile_b)
    tile_b = _round_up(_cdiv(b_aligned, grid_b), sub)
    grid_b = _cdiv(b_aligned, tile_b)
    B_p = grid_b * tile_b

    xp = jnp.pad(x, ((0, B_p - B), (0, 0)))

    flops = 2 * B_p * (2 * in_size * out_p + out_p * out_p)
    bytes_accessed = (B_p * in_size + B_p * out_p) * itemsize + resident_bytes
    cost = pl.CostEstimate(flops=flops, transcendentals=0,
                           bytes_accessed=bytes_accessed)

    if use_fused:
        wcat = jnp.concatenate([w1p, wsp], axis=1)               # (in, 2*out_p)
        resident = lambda shape: pl.BlockSpec(
            shape, lambda i: (0,) * len(shape), pipeline_mode=pl.Buffered(1))
        y = pl.pallas_call(
            functools.partial(_fused_kernel, last_layer=last_layer),
            out_shape=jax.ShapeDtypeStruct((B_p, out_p), dtype),
            grid=(grid_b,),
            in_specs=[
                pl.BlockSpec((tile_b, in_size), lambda i: (i, 0)),  # x
                resident((in_size, 2 * out_p)),                     # [W1 | Ws]
                resident((1, out_p)),                               # b1
                resident((out_p, out_p)),                           # W2
                resident((1, out_p)),                               # b2 + bs
            ],
            out_specs=pl.BlockSpec((tile_b, out_p), lambda i: (i, 0)),
            compiler_params=pltpu.CompilerParams(
                dimension_semantics=("parallel",),
                vmem_limit_bytes=budget),
            cost_estimate=cost,
        )(xp, wcat, b1p, w2p, b2sp)
    else:
        grid_k = out_p // tile_k
        resident = lambda shape: pl.BlockSpec(
            shape, lambda i, k: (0,) * len(shape), pipeline_mode=pl.Buffered(1))
        y = pl.pallas_call(
            functools.partial(_hidden_tiled_kernel, last_layer=last_layer),
            out_shape=jax.ShapeDtypeStruct((B_p, out_p), dtype),
            grid=(grid_b, grid_k),
            in_specs=[
                pl.BlockSpec((tile_b, in_size), lambda i, k: (i, 0)),  # x
                pl.BlockSpec((in_size, tile_k), lambda i, k: (0, k)),  # W1 cols
                pl.BlockSpec((1, tile_k), lambda i, k: (0, k)),        # b1 cols
                pl.BlockSpec((tile_k, out_p), lambda i, k: (k, 0)),    # W2 rows
                resident((in_size, out_p)),                            # Ws
                resident((1, out_p)),                                  # b2 + bs
            ],
            out_specs=pl.BlockSpec((tile_b, out_p), lambda i, k: (i, 0)),
            scratch_shapes=[pltpu.VMEM((tile_b, out_p), jnp.float32)],
            compiler_params=pltpu.CompilerParams(
                dimension_semantics=("parallel", "arbitrary"),
                vmem_limit_bytes=budget),
            cost_estimate=cost,
        )(xp, w1p, b1p, w2p, wsp, b2sp)

    return y[:B, :out_size]


def init_params(key, in_size, out_size, dtype=jnp.float32):
    """Deterministic synthetic init (torch Linear shapes, stored transposed)."""
    ks = jax.random.split(key, 6)
    bound1 = 1.0 / (in_size ** 0.5)
    bound2 = 1.0 / (out_size ** 0.5)
    w1 = jax.random.uniform(ks[0], (in_size, out_size), dtype, -bound1, bound1)
    b1 = jax.random.uniform(ks[1], (1, out_size), dtype, -bound1, bound1)
    w2 = jax.random.uniform(ks[2], (out_size, out_size), dtype, -bound2, bound2)
    b2 = jax.random.uniform(ks[3], (1, out_size), dtype, -bound2, bound2)
    ws = jax.random.uniform(ks[4], (in_size, out_size), dtype, -bound1, bound1)
    bs = jax.random.uniform(ks[5], (1, out_size), dtype, -bound1, bound1)
    return w1, b1, w2, b2, ws, bs


def residual_block_ref(x, w1, b1, w2, b2, ws, bs, *, last_layer=False):
    """Pure-JAX reference mirroring the PyTorch forward."""
    residual = x @ ws + bs
    out = jnp.maximum(x @ w1 + b1, 0.0)
    out = out @ w2 + b2 + residual
    if not last_layer:
        out = jnp.maximum(out, 0.0)
    return out


if __name__ == "__main__":
    key = jax.random.PRNGKey(0)
    k_x, k_p, k_x2, k_p2 = jax.random.split(key, 4)

    # Small demo: single batch tile, out padded to 128 lanes internally.
    B, in_size, out_size = 8, 32, 64
    x = jax.random.normal(k_x, (B, in_size), jnp.float32)
    params = init_params(k_p, in_size, out_size)

    out = jax.block_until_ready(residual_block(x, *params, last_layer=False))
    ref = residual_block_ref(x, *params, last_layer=False)
    assert out.shape == (B, out_size)
    assert jnp.allclose(out, ref, atol=1e-5, rtol=1e-5)

    # last_layer=True path (no final ReLU).
    out_last = jax.block_until_ready(residual_block(x, *params, last_layer=True))
    ref_last = residual_block_ref(x, *params, last_layer=True)
    assert jnp.allclose(out_last, ref_last, atol=1e-5, rtol=1e-5)

    # Multi-batch-tile + non-128 in_size (unpadded K) + padded out_size.
    B2, in2, out2 = 272, 96, 200
    x2 = jax.random.normal(k_x2, (B2, in2), jnp.float32)
    params2 = init_params(k_p2, in2, out2)
    out2_arr = jax.block_until_ready(residual_block(x2, *params2))
    ref2 = residual_block_ref(x2, *params2)
    assert out2_arr.shape == (B2, out2)
    assert jnp.allclose(out2_arr, ref2, atol=1e-4, rtol=1e-4)

    # Streamed-weight (hidden-tiled) path: 2-D grid with an f32 accumulator.
    out2_tiled = jax.block_until_ready(
        residual_block(x2, *params2, force_hidden_tiling=True, max_tile_k=128))
    assert jnp.allclose(out2_tiled, ref2, atol=1e-4, rtol=1e-4)

    # bf16 MXU path (bf16 operands, f32 accumulation, 16-row sublane tiles).
    xb = x2.astype(jnp.bfloat16)
    params_b = tuple(p.astype(jnp.bfloat16) for p in params2)
    out_b = jax.block_until_ready(residual_block(xb, *params_b))
    assert out_b.shape == (B2, out2)
    assert jnp.allclose(out_b.astype(jnp.float32), ref2, atol=0.1, rtol=0.1)

    print("KERNEL_OK")
</pallas_src>

<mosaic_0001>
module attributes {stable_mosaic.version = 11 : i64} {
  func.func @_fused_kernel(%arg0: i32, %arg1: memref<8x32xf32, #tpu.memory_space<vmem>>, %arg2: memref<32x256xf32, #tpu.memory_space<vmem>>, %arg3: memref<1x128xf32, #tpu.memory_space<vmem>>, %arg4: memref<128x128xf32, #tpu.memory_space<vmem>>, %arg5: memref<1x128xf32, #tpu.memory_space<vmem>>, %arg6: memref<8x128xf32, #tpu.memory_space<vmem>>) attributes {dimension_semantics = [#tpu.dimension_semantics<parallel>], iteration_bounds = array<i64: 1>, scalar_prefetch = 0 : i64, scratch_operands = 0 : i64, tpu.core_type = #tpu.core_type<tc>, window_params = [{transform_indices = @transform_0, window_bounds = array<i64: 8, 32>}, {pipeline_mode = #tpu.pipeline_mode<synchronous>, transform_indices = @transform_1, window_bounds = array<i64: 32, 256>}, {pipeline_mode = #tpu.pipeline_mode<synchronous>, transform_indices = @transform_2, window_bounds = array<i64: 1, 128>}, {pipeline_mode = #tpu.pipeline_mode<synchronous>, transform_indices = @transform_3, window_bounds = array<i64: 128, 128>}, {pipeline_mode = #tpu.pipeline_mode<synchronous>, transform_indices = @transform_4, window_bounds = array<i64: 1, 128>}, {transform_indices = @transform_5, window_bounds = array<i64: 8, 128>}]} {
    %c0 = arith.constant 0 : index
    %c0_0 = arith.constant 0 : index
    %0 = vector.load %arg1[%c0, %c0_0] : memref<8x32xf32, #tpu.memory_space<vmem>>, vector<8x32xf32>
    %c0_1 = arith.constant 0 : index
    %c0_2 = arith.constant 0 : index
    %1 = vector.load %arg2[%c0_1, %c0_2] : memref<32x256xf32, #tpu.memory_space<vmem>>, vector<32x256xf32>
    %cst = arith.constant dense<0.000000e+00> : vector<8x256xf32>
    %2 = tpu.matmul %0, %1, %cst {dimension_numbers = #tpu.dot_dimension_numbers<[1], [0], [0], [1], [0, 0, 1, 1], [], []>} : vector<8x32xf32>, vector<32x256xf32>, vector<8x256xf32> -> vector<8x256xf32>
    %3 = vector.extract_strided_slice %2 {offsets = [0, 0], sizes = [8, 128], strides = [1, 1]} : vector<8x256xf32> to vector<8x128xf32>
    %c0_3 = arith.constant 0 : index
    %c0_4 = arith.constant 0 : index
    %4 = vector.load %arg3[%c0_3, %c0_4] : memref<1x128xf32, #tpu.memory_space<vmem>>, vector<1x128xf32>
    %5 = vector.broadcast %4 : vector<1x128xf32> to vector<8x128xf32>
    %6 = arith.addf %3, %5 : vector<8x128xf32>
    %cst_5 = arith.constant 0.000000e+00 : f32
    %7 = vector.broadcast %cst_5 : f32 to vector<8x128xf32>
    %8 = arith.maximumf %6, %7 : vector<8x128xf32>
    %c0_6 = arith.constant 0 : index
    %c0_7 = arith.constant 0 : index
    %9 = vector.load %arg4[%c0_6, %c0_7] : memref<128x128xf32, #tpu.memory_space<vmem>>, vector<128x128xf32>
    %cst_8 = arith.constant dense<0.000000e+00> : vector<8x128xf32>
    %10 = tpu.matmul %8, %9, %cst_8 {dimension_numbers = #tpu.dot_dimension_numbers<[1], [0], [0], [1], [0, 0, 1, 1], [], []>} : vector<8x128xf32>, vector<128x128xf32>, vector<8x128xf32> -> vector<8x128xf32>
    %c0_9 = arith.constant 0 : index
    %c0_10 = arith.constant 0 : index
    %11 = vector.load %arg5[%c0_9, %c0_10] : memref<1x128xf32, #tpu.memory_space<vmem>>, vector<1x128xf32>
    %12 = vector.broadcast %11 : vector<1x128xf32> to vector<8x128xf32>
    %13 = arith.addf %10, %12 : vector<8x128xf32>
    %14 = vector.extract_strided_slice %2 {offsets = [0, 128], sizes = [8, 128], strides = [1, 1]} : vector<8x256xf32> to vector<8x128xf32>
    %15 = arith.addf %13, %14 : vector<8x128xf32>
    %cst_11 = arith.constant 0.000000e+00 : f32
    %16 = vector.broadcast %cst_11 : f32 to vector<8x128xf32>
    %17 = arith.maximumf %15, %16 : vector<8x128xf32>
    %c0_12 = arith.constant 0 : index
    %c0_13 = arith.constant 0 : index
    %18 = vector.load %arg6[%c0_12, %c0_13] : memref<8x128xf32, #tpu.memory_space<vmem>>, vector<8x128xf32>
    tpu.vector_store %arg6[%c0_12, %c0_13], %17 {strides = array<i32>} : memref<8x128xf32, #tpu.memory_space<vmem>>, vector<8x128xf32>,
    return
  }
  func.func @transform_0(%arg0: i32) -> (i32, i32) {
    %c0_i32 = arith.constant 0 : i32
    %c0_i32_0 = arith.constant 0 : i32
    return %arg0, %c0_i32 : i32, i32
  }
  func.func @transform_1(%arg0: i32) -> (i32, i32) {
    %c0_i32 = arith.constant 0 : i32
    %c0_i32_0 = arith.constant 0 : i32
    %c0_i32_1 = arith.constant 0 : i32
    return %c0_i32, %c0_i32_0 : i32, i32
  }
  func.func @transform_2(%arg0: i32) -> (i32, i32) {
    %c0_i32 = arith.constant 0 : i32
    %c0_i32_0 = arith.constant 0 : i32
    %c0_i32_1 = arith.constant 0 : i32
    return %c0_i32, %c0_i32_0 : i32, i32
  }
  func.func @transform_3(%arg0: i32) -> (i32, i32) {
    %c0_i32 = arith.constant 0 : i32
    %c0_i32_0 = arith.constant 0 : i32
    %c0_i32_1 = arith.constant 0 : i32
    return %c0_i32, %c0_i32_0 : i32, i32
  }
  func.func @transform_4(%arg0: i32) -> (i32, i32) {
    %c0_i32 = arith.constant 0 : i32
    %c0_i32_0 = arith.constant 0 : i32
    %c0_i32_1 = arith.constant 0 : i32
    return %c0_i32, %c0_i32_0 : i32, i32
  }
  func.func @transform_5(%arg0: i32) -> (i32, i32) {
    %c0_i32 = arith.constant 0 : i32
    %c0_i32_0 = arith.constant 0 : i32
    return %arg0, %c0_i32 : i32, i32
  }
}

</mosaic_0001>

<bundles_post_ra>
// kernel: tpu_custom_call.1
= control target key start
LH: loop header
LB: loop body
LE: loop exit
PB: predicated region body
PF: predicated region fallthrough
CT: control target
= control target key end

     0   :  { %10 = vsyncpa [#allocation3], 0  ;;  %s554_s0 = inlined_call_operand.hbm [shape: f32[8,32], index: 0, kind: input, shape index: {}]   ;;  %s555_s1 = inlined_call_operand.hbm [shape: f32[32,256], index: 1, kind: input, shape index: {}]   ;;  %s556_s2 = inlined_call_operand.vmem [shape: f32[1,128], index: 2, kind: input, shape index: {}]   ;;  %s557_s3 = inlined_call_operand.hbm [shape: f32[128,128], index: 3, kind: input, shape index: {}]   ;;  %s558_s4 = inlined_call_operand.vmem [shape: f32[1,128], index: 4, kind: input, shape index: {}]   ;;  %s559_s5 = inlined_call_operand.hbm [shape: f32[8,128], index: 5, kind: output, shape index: {}]  }
   0x1   :  { %11 = vsyncpa [#allocation6], 0 }
   0x2   :  { %12 = vsyncpa [#allocation4], 0  ;;  %s457_s18 = smov [#allocation5]   ;;  %s363_s22 = scalar_lea.hbm %s555_s1, 1024 }
   0x3   :  { %s28_s19 = sshll.u32 %s457_s18, 4  ;;  %p364_p0 = scmp.ne.s32.totalorder %s555_s1, %s363_s22  ;;  %s29_s19 = int_to_ptr.vmem [resolvable:$true] %s28_s19 }
   0x4   :  { %p367_p1 = scmp.lt.u32.totalorder %s363_s22, %s555_s1 }
   0x6   :  { %p369_p2 = pnand %p367_p1, %p364_p0 }
   0x8   :  { %372 = shalt.err (!%p369_p2)
}
   0x9   :  { %s373_s27 = scalar_lea.vmem %s29_s19, 1024  ;;  %p378_p4 = scmp.lt.s32.totalorder %s29_s19, %s29_s19 }
   0xa   :  { %p374_p3 = scmp.ne.s32.totalorder %s29_s19, %s373_s27  ;;  %p379_p5 = scmp.lt.s32.totalorder %s373_s27, %s373_s27 }
   0xc   :  { %p380_p6 = por %p379_p5, %p378_p4 }
   0xe   :  { %p381_p7 = pnand %p380_p6, %p374_p3 }
  0x10   :  { %384 = shalt.err (!%p381_p7)
}
  0x11   :  { %s458_s28 = smov 256   ;;  %s459_s29 = smov 16  }
  0x12   :  { %34 = dma.hbm_to_vmem [thread:$0]  %s555_s1, 1024, %s29_s19, [#allocation6], %s458_s28, %s458_s28, %s459_s29  }
  0x13   :  { %s460_s7 = smov [#allocation2]   ;;  %s461_s9 = smov [#allocation7]  }
  0x14   :  { %s19_s8 = sshll.u32 %s460_s7, 4  ;;  %s42_s10 = sshll.u32 %s461_s9, 4  ;;  %s20_s8 = int_to_ptr.vmem [resolvable:$true] %s19_s8  ;;  %s43_s10 = int_to_ptr.vmem [resolvable:$true] %s42_s10 }
  0x15   :  { %s385_s13 = scalar_lea.hbm %s554_s0, 128 }
  0x16   :  { %p386_p8 = scmp.ne.s32.totalorder %s554_s0, %s385_s13  ;;  %p389_p9 = scmp.lt.u32.totalorder %s385_s13, %s554_s0 }
  0x18   :  { %p391_p10 = pnand %p389_p9, %p386_p8 }
  0x1a   :  { %394 = shalt.err (!%p391_p10)
}
  0x1b   :  { %s395_s1 = scalar_lea.vmem %s20_s8, 128  ;;  %p400_p12 = scmp.lt.s32.totalorder %s20_s8, %s20_s8 }
  0x1c   :  { %p396_p11 = scmp.ne.s32.totalorder %s20_s8, %s395_s1  ;;  %p401_p13 = scmp.lt.s32.totalorder %s395_s1, %s395_s1 }
  0x1e   :  { %p402_p0 = por %p401_p13, %p400_p12 }
  0x20   :  { %p403_p1 = pnand %p402_p0, %p396_p11 }
  0x22   :  { %406 = shalt.err (!%p403_p1)
}
  0x23   :  { %22 = dma.hbm_to_vmem [thread:$0]  %s554_s0, 128, %s20_s8, [#allocation3]  }
  0x24   :  { %s407_s22 = scalar_lea.hbm %s557_s3, 2048 }
  0x25   :  { %p408_p2 = scmp.ne.s32.totalorder %s557_s3, %s407_s22  ;;  %p411_p3 = scmp.lt.u32.totalorder %s407_s22, %s557_s3 }
  0x27   :  { %p413_p4 = pnand %p411_p3, %p408_p2 }
  0x29   :  { %416 = shalt.err (!%p413_p4)
}
  0x2a   :  { %s417_s27 = scalar_lea.vmem %s43_s10, 2048  ;;  %p422_p6 = scmp.lt.s32.totalorder %s43_s10, %s43_s10 }
  0x2b   :  { %p418_p5 = scmp.ne.s32.totalorder %s43_s10, %s417_s27  ;;  %p423_p7 = scmp.lt.s32.totalorder %s417_s27, %s417_s27 }
  0x2d   :  { %p424_p8 = por %p423_p7, %p422_p6 }
  0x2f   :  { %p425_p9 = pnand %p424_p8, %p418_p5 }
  0x31   :  { %428 = shalt.err (!%p425_p9)
}
  0x32   :  { %s462_s0 = smov 128   ;;  %s463_s28 = smov 8  }
  0x33   :  { %48 = dma.hbm_to_vmem [thread:$0]  %s557_s3, 2048, %s43_s10, [#allocation6], %s462_s0, %s462_s0, %s463_s28  }
  0x34   :  { %451 = dma.done.wait [#allocation3], 128  }
  0x35   :  { %452 = vsyncadd [#allocation3], 4294967168 }
  0x36   :  { %453 = dma.done.wait [#allocation6], 3072  }
  0x37   :  { %454 = vsyncadd [#allocation6], 4294964224  ;;  %v464_v0 = vmov 0.0   ;;  %v465_v1 = vmov 0.0|0.0   ;;  %v62_v2 = vld [vmem:[#allocation5 + $0x8] sm:$0xff]  ;;  %v64_v3 = vld [vmem:[#allocation5 + $0x18] sm:$0xff] }
  0x38   :  { %137 = vmatprep.mubr.f32.mxu0 %v464_v0  ;;  %328 = vmatprep.subr.bf16.mxu1 %v465_v1  ;;  %v61_v4 = vld [vmem:[#allocation5] sm:$0xff]  ;;  %v320_v5 = vpack.c.bf16 %v64_v3, %v62_v2  ;;  %v63_v6 = vld [vmem:[#allocation5 + $0x10] sm:$0xff]  ;;  %v66_v7 = vld [vmem:[#allocation5 + $0x28] sm:$0xff]  ;;  %vm69_vm0 = vcmask 261120   ;;  %vm466_vm1 = vmmov 0   ;;  %s467_s9 = smov [#allocation8]  }
  0x39   :  { %v68_v8 = vld [vmem:[#allocation5 + $0x38] sm:$0xff]  ;;  %v322_v9 = vpack.c.bf16 %v63_v6, %v61_v4  ;;  %v65_v11 = vld [vmem:[#allocation5 + $0x20] sm:$0xff]  ;;  %v67_v12 = vld [vmem:[#allocation5 + $0x30] sm:$0xff]  ;;  %317 = vmatprep.mubr.msk.f32.mxu1 %vm466_vm1, %v464_v0  ;;  %s255_s10 = sshll.u32 %s467_s9, 4  ;;  %s256_s10 = int_to_ptr.vmem [resolvable:$true] %s255_s10 }
  0x3a   :  { %v324_v10 = vpack.c.bf16 %v68_v8, %v66_v7  ;;  %321 = vmatprep.subr.bf16.mxu0 %v320_v5  ;;  %v153_v13 = vld [vmem:[#allocation7] sm:$0xff]  ;;  %v154_v14 = vld [vmem:[#allocation7 + $0x8] sm:$0xff]  ;;  %v155_v15 = vld [vmem:[#allocation7 + $0x10] sm:$0xff]  ;;  %v326_v16 = vpack.c.bf16 %v67_v12, %v65_v11  ;;  %s429_s11 = scalar_lea.vmem %s256_s10, 128  ;;  %p434_p11 = scmp.lt.s32.totalorder %s256_s10, %s256_s10 }
  0x3b   :  { %323 = vmatpush1.bf16.msra.mxu0 %v322_v9  ;;  %v329_v17 = vpack.c.bf16 %v154_v14, %v153_v13  ;;  %v156_v18 = vld [vmem:[#allocation7 + $0x18] sm:$0xff]  ;;  %v157_v20 = vld [vmem:[#allocation7 + $0x20] sm:$0xff]  ;;  %v158_v21 = vld [vmem:[#allocation7 + $0x28] sm:$0xff]  ;;  %p430_p10 = scmp.ne.s32.totalorder %s256_s10, %s429_s11  ;;  %p435_p12 = scmp.lt.s32.totalorder %s429_s11, %s429_s11 }
  0x3c   :  { %325 = vmatprep.subr.bf16.mxu0 %v324_v10  ;;  %v332_v19 = vpack.c.bf16 %v156_v18, %v155_v15  ;;  %v60_v22 = vld [vmem:[#allocation2] sm:$0xff]  ;;  %v335_v23 = vpack.c.bf16 %v158_v21, %v157_v20  ;;  %v159_v24 = vld [vmem:[#allocation7 + $0x30] sm:$0xff]  ;;  %v161_v27 = vld [vmem:[#allocation7 + $0x40] sm:$0xff] }
  0x3d   :  { %330 = vmatpush3.bf16.msra.mxu1 %v329_v17  ;;  %v160_v25 = vld [vmem:[#allocation7 + $0x38] sm:$0xff]  ;;  %v162_v28 = vld [vmem:[#allocation7 + $0x48] sm:$0xff]  ;;  %v163_v30 = vld [vmem:[#allocation7 + $0x50] sm:$0xff]  ;;  %p436_p13 = por %p435_p12, %p434_p11 }
  0x3e   :  { %331 = vmatprep.subr.bf16.mxu1 %v465_v1  ;;  %v338_v26 = vpack.c.bf16 %v160_v25, %v159_v24  ;;  %v341_v29 = vpack.c.bf16 %v162_v28, %v161_v27  ;;  %v164_v31 = vld [vmem:[#allocation7 + $0x58] sm:$0xff]  ;;  %v165_v33 = vld [vmem:[#allocation7 + $0x60] sm:$0xff]  ;;  %v166_v34 = vld [vmem:[#allocation7 + $0x68] sm:$0xff] }
  0x3f   :  { %327 = vmatpush1.bf16.msra.mxu0 %v326_v16  ;;  %v344_v32 = vpack.c.bf16 %v164_v31, %v163_v30  ;;  %v347_v35 = vpack.c.bf16 %v166_v34, %v165_v33  ;;  %v167_v36 = vld [vmem:[#allocation7 + $0x70] sm:$0xff]  ;;  %v168_v37 = vld [vmem:[#allocation7 + $0x78] sm:$0xff]  ;;  %p437_p0 = pnand %p436_p13, %p430_p10 }
  0x40   :  { %v350_v38 = vpack.c.bf16 %v168_v37, %v167_v36  ;;  %v266_v39 = vld [vmem:[%s556_s2] ss:$0 sm:$0xff] }
  0x41   :  { %333 = vmatpush3.bf16.msra.mxu1 %v332_v19  ;;  %v267_v44 = vld [vmem:[%s558_s4] ss:$0 sm:$0xff] }
  0x42   :  { %265 = vmatmul.mubr.msk.f32.vlgmr.msra.gmra.mrb[0].mxu0 %vm69_vm0, %v60_v22  ;;  %334 = vmatprep.subr.bf16.mxu1 %v465_v1 }
  0x45   :  { %336 = vmatpush3.bf16.msra.mxu1 %v335_v23 }
  0x46   :  { %337 = vmatprep.subr.bf16.mxu1 %v465_v1 }
  0x49   :  { %339 = vmatpush3.bf16.msra.mxu1 %v338_v26 }
  0x4a   :  { %340 = vmatprep.subr.bf16.mxu1 %v465_v1 }
  0x4d   :  { %342 = vmatpush3.bf16.msra.mxu1 %v341_v29 }
  0x4e   :  { %343 = vmatprep.subr.bf16.mxu1 %v465_v1 }
  0x51   :  { %345 = vmatpush3.bf16.msra.mxu1 %v344_v32 }
  0x52   :  { %346 = vmatprep.subr.bf16.mxu1 %v465_v1 }
  0x55   :  { %348 = vmatpush3.bf16.msra.mxu1 %v347_v35 }
  0x56   :  { %349 = vmatprep.subr.bf16.mxu1 %v465_v1 }
  0x59   :  { %351 = vmatpush3.bf16.msra.mxu1 %v350_v38 }
 0x115   :  { %v139_v40 = vpop.f32.mrb[0].mxu0 }
 0x116   :  { %v151_v41 = vadd.f32 %v266_v39, %v139_v40  ;;  %v141_v42 = vpop.f32.mrb[1].mxu0 }
 0x118   :  { %v152_v43 = vmax.f32 %v151_v41, 0.0 }
 0x11a   :  { %318 = vmatmul.mubr.f32.vlgmr.msra.gmra.mrb[0].mxu1 %v152_v43 }
 0x1ed   :  { %v242_v45 = vpop.f32.mrb[0].mxu1 }
 0x1ee   :  { %v243_v46 = vadd.f32 %v267_v44, %v242_v45  ;;  %v319_v47 = vpop.f32.mrb[1].mxu1 }
 0x1f0   :  { %v246_v48 = vadd.f32 %v243_v46, %v141_v42 }
 0x1f2   :  { %v247_v49 = vmax.f32 %v246_v48, 0.0 }
 0x1f4   :  { %248 = vst [vmem:[#allocation8] sm:$0xff] %v247_v49 }
 0x1f5   :  { %440 = shalt.err (!%p437_p0)
}
 0x1f6   :  { %s441_s4 = scalar_lea.hbm %s559_s5, 128 }
 0x1f7   :  { %p442_p1 = scmp.ne.s32.totalorder %s559_s5, %s441_s4  ;;  %p445_p2 = scmp.lt.u32.totalorder %s441_s4, %s559_s5 }
 0x1f9   :  { %p447_p3 = pnand %p445_p2, %p442_p1 }
 0x1fb   :  { %450 = shalt.err (!%p447_p3)
}
 0x1fc   :  { %258 = dma.vmem_to_hbm [thread:$0]  %s256_s10, 128, %s559_s5, [#allocation4]  }
 0x1fd   :  { %455 = dma.done.wait [#allocation4], 128  }
 0x1fe   :  { %456 = vsyncadd [#allocation4], 4294967168 }
 0x1ff   :  { %262 = vsyncpa [#allocation3], 1 }
 0x200   :  { %263 = vsyncpa [#allocation6], 1 }
 0x201   :  { %264 = vsyncpa [#allocation4], 1 }

</bundles_post_ra>
